<compile_context>
chip_gen: v6e
topology: v6e:2x2x1
jax: 0.10.0
libtpu: 0.0.40
codegen_flags: <defaults>
</compile_context>

<pallas_src>
import jax
import jax.numpy as jnp
from jax.experimental import pallas as pl
from jax.experimental.pallas import tpu as pltpu


def _round_up(n, m):
    return ((n + m - 1) // m) * m


def _mlp_kernel(xt_ref, w1_ref, b1_ref, w2_ref, b2_ref, w3_ref, b3_ref, o_ref):
    # Activations carry the batch on the lane axis (last dim = TB).

    # Layer 1: Linear(10, 16) + ReLU. bf16 x bf16 -> f32 accumulation on the MXU.
    # (Could also be done as 10 unrolled VPU broadcast-MACs if MXU-bound further.)
    h1 = jnp.dot(w1_ref[...], xt_ref[...], preferred_element_type=jnp.float32)
    h1 = jnp.maximum(h1 + b1_ref[...], 0.0)                              # (16, TB) f32

    # Layer 2: Linear(16, 16) + ReLU. Re-cast activations to bf16 for the MXU;
    # accumulate in f32, elementwise in f32.
    h2 = jnp.dot(w2_ref[...], h1.astype(jnp.bfloat16),
                 preferred_element_type=jnp.float32)
    h2 = jnp.maximum(h2 + b2_ref[...], 0.0)                              # (16, TB) f32

    # Layer 3: Linear(16, 1) is just a 16-way weighted sum per sample -- keep it
    # off the MXU: VPU broadcast-multiply + XLU sublane reduction.
    z = jnp.sum(w3_ref[...] * h2, axis=0, keepdims=True) + b3_ref[...]   # (1, TB)

    # Robust sigmoid via tanh: goes to the EUP, no exp overflow, no VPU divide.
    o_ref[...] = 0.5 * (jnp.tanh(0.5 * z) + 1.0)


def prepare_params(params):
    """One-time glue (hoisted out of the per-call path).

    MXU operands (W1, W2) are cast to bf16 (f32 accumulation happens in-kernel);
    everything touched by the VPU (biases, the 1x16 output weights) stays f32
    (v5e has no bf16 VPU/EUP). W3 becomes a (16, 1) column so layer 3 can be a
    broadcast-multiply + sublane reduction instead of an MXU pass.
    """
    f32, bf16 = jnp.float32, jnp.bfloat16
    return {
        "w1": params["w1"].astype(bf16),                 # (16, 10) bf16
        "b1": params["b1"].reshape(-1, 1).astype(f32),   # (16, 1)  f32
        "w2": params["w2"].astype(bf16),                 # (16, 16) bf16
        "b2": params["b2"].reshape(-1, 1).astype(f32),   # (16, 1)  f32
        "w3": params["w3"].reshape(-1, 1).astype(f32),   # (16, 1)  f32 column
        "b3": params["b3"].reshape(1, 1).astype(f32),    # (1, 1)   f32
    }


def sequential_nn_forward(x, prepared, *, tb=32768):
    """x: (B, 10) float32. prepared: output of prepare_params.
    Returns (B, 1) float32 sigmoid output."""
    B = x.shape[0]
    B_pad = _round_up(B, 128)

    # Batch tile (lanes): multiple of 128. Aim for >=4 grid steps so the
    # "parallel" axis shards across both v7x TensorCores, keep tiles >= 2048
    # lanes to amortize the ~0.35us per-grid-step overhead, and cap at `tb`
    # (VMEM budget sized for v7x's 64 MiB) and B_pad.
    TB = _round_up(pl.cdiv(B_pad, 4), 128)
    TB = max(TB, 2048)
    TB = min(TB, tb, B_pad)
    grid = pl.cdiv(B_pad, TB)  # Pallas masks the final partial block.

    # Batch-on-lanes: kernel sees x^T (10, B_pad) in bf16; padded columns are
    # zeros (their outputs are discarded below). Under jit + allow_input_fusion
    # this pad/transpose fuses into the pallas_call input instead of doing an
    # extra HBM round trip.
    xt = jnp.zeros((10, B_pad), jnp.bfloat16).at[:, :B].set(
        x.astype(jnp.bfloat16).T)

    const = lambda i: (0, 0)
    cost = pl.CostEstimate(
        # 2 MXU layers + the VPU/XLU output layer; tanh on the EUP.
        flops=2 * B_pad * (10 * 16 + 16 * 16 + 16),
        transcendentals=B_pad,
        bytes_accessed=B_pad * (10 * 2 + 1 * 4)
        + 2 * (16 * 10 + 16 * 16) + 4 * (16 + 16 + 16 + 1),
    )

    yt = pl.pallas_call(
        _mlp_kernel,
        out_shape=jax.ShapeDtypeStruct((1, B_pad), jnp.float32),
        grid_spec=pltpu.PrefetchScalarGridSpec(
            num_scalar_prefetch=0,
            grid=(grid,),
            in_specs=[
                pl.BlockSpec((10, TB), lambda i: (0, i)),  # x^T streamed per tile
                pl.BlockSpec((16, 10), const),             # W1 (resident, bf16)
                pl.BlockSpec((16, 1), const),              # b1 (f32)
                pl.BlockSpec((16, 16), const),             # W2 (resident, bf16)
                pl.BlockSpec((16, 1), const),              # b2 (f32)
                pl.BlockSpec((16, 1), const),              # W3 column (f32, VPU path)
                pl.BlockSpec((1, 1), const),               # b3 (f32)
            ],
            out_specs=pl.BlockSpec((1, TB), lambda i: (0, i)),
        ),
        compiler_params=pltpu.CompilerParams(
            dimension_semantics=("parallel",),        # shard batch tiles across TCs
            vmem_limit_bytes=48 << 20,                # headroom under v7x's 64 MiB
            allow_input_fusion=[True] + [False] * 6,  # fuse the x^T pad/transpose
        ),
        cost_estimate=cost,
    )(xt, prepared["w1"], prepared["b1"], prepared["w2"], prepared["b2"],
      prepared["w3"], prepared["b3"])

    return yt[:, :B].T  # back to (B, 1) f32


def init_params(key):
    """Deterministic init mimicking PyTorch's Linear default:
    U(-1/sqrt(fan_in), 1/sqrt(fan_in)) for both weights and biases."""
    keys = jax.random.split(key, 6)

    def uniform(k, shape, fan_in):
        bound = 1.0 / jnp.sqrt(jnp.float32(fan_in))
        return jax.random.uniform(k, shape, jnp.float32, -bound, bound)

    return {
        "w1": uniform(keys[0], (16, 10), 10),
        "b1": uniform(keys[1], (16,), 10),
        "w2": uniform(keys[2], (16, 16), 16),
        "b2": uniform(keys[3], (16,), 16),
        "w3": uniform(keys[4], (1, 16), 16),
        "b3": uniform(keys[5], (1,), 16),
    }


if __name__ == "__main__":
    key = jax.random.PRNGKey(0)
    k_x, k_p = jax.random.split(key)

    B = 8
    x = jax.random.normal(k_x, (B, 10), jnp.float32)
    params = init_params(k_p)
    prepared = prepare_params(params)       # one-time glue, hoisted out of forward

    fwd = jax.jit(sequential_nn_forward)    # lets the pad/transpose fuse into the call
    y = fwd(x, prepared)
    jax.block_until_ready(y)
    assert y.shape == (B, 1)

    # Matched-precision reference (bf16 dot operands, f32 accumulation,
    # tanh-form sigmoid): verifies the kernel computes exactly what it should.
    xb = x.astype(jnp.bfloat16)
    h1m = jnp.maximum(
        jnp.dot(xb, prepared["w1"].T, preferred_element_type=jnp.float32)
        + params["b1"], 0.0)
    h2m = jnp.maximum(
        jnp.dot(h1m.astype(jnp.bfloat16), prepared["w2"].T,
                preferred_element_type=jnp.float32) + params["b2"], 0.0)
    zm = h2m @ params["w3"].T + params["b3"]
    y_match = 0.5 * (jnp.tanh(0.5 * zm) + 1.0)
    assert jnp.allclose(y, y_match, atol=2e-3), "mismatch vs matched-precision ref"

    # Full-f32 PyTorch-semantics reference:
    # y = sigmoid(relu(relu(x W1^T + b1) W2^T + b2) W3^T + b3).
    # Tolerance is loosened because the kernel streams bf16 MXU operands.
    h1 = jnp.maximum(x @ params["w1"].T + params["b1"], 0.0)
    h2 = jnp.maximum(h1 @ params["w2"].T + params["b2"], 0.0)
    y_ref = jax.nn.sigmoid(h2 @ params["w3"].T + params["b3"])
    assert jnp.allclose(y, y_ref, atol=3e-2), "mismatch vs f32 reference"

    print("KERNEL_OK")
</pallas_src>

<mosaic_0001>
module attributes {stable_mosaic.version = 11 : i64} {
  func.func @_mlp_kernel(%arg0: i32, %arg1: memref<10x128xbf16, #tpu.memory_space<vmem>>, %arg2: memref<16x10xbf16, #tpu.memory_space<vmem>>, %arg3: memref<16x1xf32, #tpu.memory_space<vmem>>, %arg4: memref<16x16xbf16, #tpu.memory_space<vmem>>, %arg5: memref<16x1xf32, #tpu.memory_space<vmem>>, %arg6: memref<16x1xf32, #tpu.memory_space<vmem>>, %arg7: memref<1x1xf32, #tpu.memory_space<vmem>>, %arg8: memref<1x128xf32, #tpu.memory_space<vmem>>) attributes {dimension_semantics = [#tpu.dimension_semantics<parallel>], iteration_bounds = array<i64: 1>, scalar_prefetch = 0 : i64, scratch_operands = 0 : i64, tpu.core_type = #tpu.core_type<tc>, window_params = [{transform_indices = @transform_0, window_bounds = array<i64: 10, 128>}, {pipeline_mode = #tpu.pipeline_mode<synchronous>, transform_indices = @transform_1, window_bounds = array<i64: 16, 10>}, {pipeline_mode = #tpu.pipeline_mode<synchronous>, transform_indices = @transform_2, window_bounds = array<i64: 16, 1>}, {pipeline_mode = #tpu.pipeline_mode<synchronous>, transform_indices = @transform_3, window_bounds = array<i64: 16, 16>}, {pipeline_mode = #tpu.pipeline_mode<synchronous>, transform_indices = @transform_4, window_bounds = array<i64: 16, 1>}, {pipeline_mode = #tpu.pipeline_mode<synchronous>, transform_indices = @transform_5, window_bounds = array<i64: 16, 1>}, {pipeline_mode = #tpu.pipeline_mode<synchronous>, transform_indices = @transform_6, window_bounds = array<i64: 1, 1>}, {transform_indices = @transform_7, window_bounds = array<i64: 1, 128>}]} {
    %c0 = arith.constant 0 : index
    %c0_0 = arith.constant 0 : index
    %0 = vector.load %arg2[%c0, %c0_0] : memref<16x10xbf16, #tpu.memory_space<vmem>>, vector<16x10xbf16>
    %c0_1 = arith.constant 0 : index
    %c0_2 = arith.constant 0 : index
    %1 = vector.load %arg1[%c0_1, %c0_2] : memref<10x128xbf16, #tpu.memory_space<vmem>>, vector<10x128xbf16>
    %cst = arith.constant dense<0.000000e+00> : vector<16x128xf32>
    %2 = tpu.matmul %0, %1, %cst {dimension_numbers = #tpu.dot_dimension_numbers<[1], [0], [0], [1], [0, 0, 1, 1], [], []>} : vector<16x10xbf16>, vector<10x128xbf16>, vector<16x128xf32> -> vector<16x128xf32>
    %c0_3 = arith.constant 0 : index
    %c0_4 = arith.constant 0 : index
    %3 = vector.load %arg3[%c0_3, %c0_4] : memref<16x1xf32, #tpu.memory_space<vmem>>, vector<16x1xf32>
    %4 = vector.broadcast %3 : vector<16x1xf32> to vector<16x128xf32>
    %5 = arith.addf %2, %4 : vector<16x128xf32>
    %cst_5 = arith.constant 0.000000e+00 : f32
    %6 = vector.broadcast %cst_5 : f32 to vector<16x128xf32>
    %7 = arith.maximumf %5, %6 : vector<16x128xf32>
    %c0_6 = arith.constant 0 : index
    %c0_7 = arith.constant 0 : index
    %8 = vector.load %arg4[%c0_6, %c0_7] : memref<16x16xbf16, #tpu.memory_space<vmem>>, vector<16x16xbf16>
    %9 = arith.truncf %7 : vector<16x128xf32> to vector<16x128xbf16>
    %cst_8 = arith.constant dense<0.000000e+00> : vector<16x128xf32>
    %10 = tpu.matmul %8, %9, %cst_8 {dimension_numbers = #tpu.dot_dimension_numbers<[1], [0], [0], [1], [0, 0, 1, 1], [], []>} : vector<16x16xbf16>, vector<16x128xbf16>, vector<16x128xf32> -> vector<16x128xf32>
    %c0_9 = arith.constant 0 : index
    %c0_10 = arith.constant 0 : index
    %11 = vector.load %arg5[%c0_9, %c0_10] : memref<16x1xf32, #tpu.memory_space<vmem>>, vector<16x1xf32>
    %12 = vector.broadcast %11 : vector<16x1xf32> to vector<16x128xf32>
    %13 = arith.addf %10, %12 : vector<16x128xf32>
    %cst_11 = arith.constant 0.000000e+00 : f32
    %14 = vector.broadcast %cst_11 : f32 to vector<16x128xf32>
    %15 = arith.maximumf %13, %14 : vector<16x128xf32>
    %c0_12 = arith.constant 0 : index
    %c0_13 = arith.constant 0 : index
    %16 = vector.load %arg6[%c0_12, %c0_13] : memref<16x1xf32, #tpu.memory_space<vmem>>, vector<16x1xf32>
    %17 = vector.broadcast %16 : vector<16x1xf32> to vector<16x128xf32>
    %18 = arith.mulf %17, %15 : vector<16x128xf32>
    %cst_14 = arith.constant dense<0.000000e+00> : vector<128xf32>
    %19 = vector.multi_reduction <add>, %18, %cst_14 [0] : vector<16x128xf32> to vector<128xf32>
    %20 = vector.shape_cast %19 : vector<128xf32> to vector<1x128xf32>
    %c0_15 = arith.constant 0 : index
    %c0_16 = arith.constant 0 : index
    %21 = vector.load %arg7[%c0_15, %c0_16] : memref<1x1xf32, #tpu.memory_space<vmem>>, vector<1x1xf32>
    %22 = vector.broadcast %21 : vector<1x1xf32> to vector<1x128xf32>
    %23 = arith.addf %20, %22 : vector<1x128xf32>
    %cst_17 = arith.constant 5.000000e-01 : f32
    %24 = vector.broadcast %cst_17 : f32 to vector<1x128xf32>
    %25 = arith.mulf %24, %23 : vector<1x128xf32>
    %26 = math.tanh %25 : vector<1x128xf32>
    %cst_18 = arith.constant 1.000000e+00 : f32
    %27 = vector.broadcast %cst_18 : f32 to vector<1x128xf32>
    %28 = arith.addf %26, %27 : vector<1x128xf32>
    %cst_19 = arith.constant 5.000000e-01 : f32
    %29 = vector.broadcast %cst_19 : f32 to vector<1x128xf32>
    %30 = arith.mulf %29, %28 : vector<1x128xf32>
    %c0_20 = arith.constant 0 : index
    %c0_21 = arith.constant 0 : index
    %31 = vector.load %arg8[%c0_20, %c0_21] : memref<1x128xf32, #tpu.memory_space<vmem>>, vector<1x128xf32>
    tpu.vector_store %arg8[%c0_20, %c0_21], %30 {strides = array<i32>} : memref<1x128xf32, #tpu.memory_space<vmem>>, vector<1x128xf32>,
    return
  }
  func.func @transform_0(%arg0: i32) -> (i32, i32) {
    %c0_i32 = arith.constant 0 : i32
    %c0_i32_0 = arith.constant 0 : i32
    return %c0_i32, %arg0 : i32, i32
  }
  func.func @transform_1(%arg0: i32) -> (i32, i32) {
    %c0_i32 = arith.constant 0 : i32
    %c0_i32_0 = arith.constant 0 : i32
    %c0_i32_1 = arith.constant 0 : i32
    return %c0_i32, %c0_i32_0 : i32, i32
  }
  func.func @transform_2(%arg0: i32) -> (i32, i32) {
    %c0_i32 = arith.constant 0 : i32
    %c0_i32_0 = arith.constant 0 : i32
    %c0_i32_1 = arith.constant 0 : i32
    return %c0_i32, %c0_i32_0 : i32, i32
  }
  func.func @transform_3(%arg0: i32) -> (i32, i32) {
    %c0_i32 = arith.constant 0 : i32
    %c0_i32_0 = arith.constant 0 : i32
    %c0_i32_1 = arith.constant 0 : i32
    return %c0_i32, %c0_i32_0 : i32, i32
  }
  func.func @transform_4(%arg0: i32) -> (i32, i32) {
    %c0_i32 = arith.constant 0 : i32
    %c0_i32_0 = arith.constant 0 : i32
    %c0_i32_1 = arith.constant 0 : i32
    return %c0_i32, %c0_i32_0 : i32, i32
  }
  func.func @transform_5(%arg0: i32) -> (i32, i32) {
    %c0_i32 = arith.constant 0 : i32
    %c0_i32_0 = arith.constant 0 : i32
    %c0_i32_1 = arith.constant 0 : i32
    return %c0_i32, %c0_i32_0 : i32, i32
  }
  func.func @transform_6(%arg0: i32) -> (i32, i32) {
    %c0_i32 = arith.constant 0 : i32
    %c0_i32_0 = arith.constant 0 : i32
    %c0_i32_1 = arith.constant 0 : i32
    return %c0_i32, %c0_i32_0 : i32, i32
  }
  func.func @transform_7(%arg0: i32) -> (i32, i32) {
    %c0_i32 = arith.constant 0 : i32
    %c0_i32_0 = arith.constant 0 : i32
    return %c0_i32, %arg0 : i32, i32
  }
}

</mosaic_0001>

<bundles_post_ra>
// kernel: sequential_nn_forward.2
= control target key start
LH: loop header
LB: loop body
LE: loop exit
PB: predicated region body
PF: predicated region fallthrough
CT: control target
= control target key end

     0   :  { %s394_s0 = inlined_call_operand.vmem [shape: bf16[16,10], index: 0, kind: input, shape index: {}]   ;;  %s395_s1 = inlined_call_operand.vmem [shape: f32[16,1], index: 1, kind: input, shape index: {}]   ;;  %s396_s2 = inlined_call_operand.vmem [shape: bf16[16,16], index: 2, kind: input, shape index: {}]   ;;  %s397_s3 = inlined_call_operand.vmem [shape: f32[16,1], index: 3, kind: input, shape index: {}]   ;;  %s398_s4 = inlined_call_operand.vmem [shape: f32[16,1], index: 4, kind: input, shape index: {}]   ;;  %s399_s5 = inlined_call_operand.<no memory space> [shape: f32[1,1], index: 5, kind: input, shape index: {}]   ;;  %s400_s6 = inlined_call_operand.vmem [shape: bf16[10,8], index: 6, kind: input, shape index: {}]   ;;  %s401_s7 = inlined_call_operand.<no memory space> [shape: bf16[], index: 7, kind: input, shape index: {}]   ;;  %s402_s8 = inlined_call_operand.vmem [shape: f32[1,128], index: 8, kind: output, shape index: {}]  }
   0x1   :  { %v13_v0 = vstv %s401_s7  ;;  %v18_v1 = vstv %s399_s5 }
   0x2   :  { %v14_v2 = vunpack.i.l.bf16 %v13_v0  ;;  %19 = vst [vmem:[#allocation7] sm:$0x1] %v18_v1 }
   0x3   :  { %v43_v3 = vld [vmem:[%s400_s6] sm:$0xff]   ;;  %v51_v4 = vlaneseq  ;;  %v306_v6 = vmov 0.0   ;;  %vm307_vm0 = vmmov 0   ;;  %v308_v10 = vmov 0   ;;  %v94_v13 = vld [vmem:[%s395_s1 + $0x8] sm:$0xff] }
   0x4   :  { %v44_v5 = vunpack.c.l.bf16 %v43_v3  ;;  %284 = vmatprep.subr.bf16.mxu0 %v306_v6  ;;  %286 = vmatprep.mubr.msk.bf16.mxu0 %vm307_vm0, %v306_v6  ;;  %v93_v7 = vld [vmem:[%s395_s1] sm:$0xff]  ;;  %v71_v11 = vunpack.c.h.bf16 %v43_v3  ;;  %vm119_vm3 = vcmask 1044480   ;;  %vm115_vm4 = vcmask 80896   ;;  %v170_v25 = vld [vmem:[%s397_s3 + $0x8] sm:$0xff] }
   0x5   :  { %v52_v8 = vand.u32 127, %v51_v4  ;;  %v366_v9 = vshrl.u32 %v51_v4, 7  ;;  %299 = vset.pattern.permute.xlu0 %v308_v10  ;;  %290 = vmatprep.subr.bf16.mxu1 %v306_v6  ;;  %v233_v18 = vld [vmem:[%s398_s4] sm:$0xff]  ;;  %v234_v26 = vld [vmem:[%s398_s4 + $0x8] sm:$0xff]  ;;  %vm186_vm5 = vcmask 130048  }
   0x6   :  { %97 = vperm.xlu0 %299, %v93_v7   ;;  %292 = vmatprep.mubr.msk.bf16.mxu1 %vm307_vm0, %v306_v6  ;;  %v302_v23 = vld [vmem:[%s394_s0] sm:$0xff]  }
   0x7   :  { %vm54_vm1 = vcmp.lt.s32.totalorder %v52_v8, 8  ;;  %v75_v12 = vadd.s32 8, %v366_v9  ;;  %300 = vset.pattern.permute.xlu1 %v308_v10  ;;  %v169_v24 = vld [vmem:[%s397_s3] sm:$0xff]  ;;  %v262_v57 = vsub.s32 0, %v366_v9 }
   0x8   :  { %v55_v14 = vsel %vm54_vm1, %v44_v5, %v14_v2  ;;  %173 = vperm.xlu1 %300, %v169_v24   ;;  %v303_v38 = vld [vmem:[%s396_s2] sm:$0xff]  }
   0x9   :  { %v56_v15 = vpack.c.bf16 %v306_v6, %v55_v14  ;;  %vm76_vm2 = vcmp.lt.s32.totalorder %v75_v12, 10  ;;  %v254_v20 = vld [vmem:[#allocation7] sm:$0x1] }
   0xa   :  { %v77_v16 = vsel %vm76_vm2, %v71_v11, %v14_v2  ;;  %102 = vperm.xlu0 %299, %v94_v13  }
   0xb   :  { %59 = vst [vmem:[#allocation8] sm:$0xf] %v56_v15  ;;  %v82_v17 = vsel %vm54_vm1, %v77_v16, %v14_v2 }
   0xc   :  { %v84_v19 = vpack.c.bf16 %v306_v6, %v82_v17  ;;  %178 = vperm.xlu1 %300, %v170_v25  }
   0xe   :  { %87 = vst [vmem:[#allocation8 + $0x4] sm:$0xf] %v84_v19  ;;  %237 = vperm.xlu0 %299, %v233_v18  }
  0x10   :  { %242 = vperm.xlu1 %300, %v234_v26  }
  0x12   :  { %257 = vperm.xlu0 %299, %v254_v20  }
  0x15   :  { %v301_v21 = vld [vmem:[#allocation8] sm:$0x1f]  }
  0x16   :  { %v121_v22 = vsel %vm119_vm3, %v301_v21, 0 }
  0x17   :  { %285 = vmatpush3.bf16.msra.mxu0 %v121_v22 }
  0x1a   :  { %287 = vmatmul.mubr.msk.bf16.vlgmr.msra.gmra.mxu0 %vm115_vm4, %v302_v23 }
  0x81   :  { %v98_v27 = vpop.permute.xlu0 %97 }
  0x83   :  { %v174_v39 = vpop.permute.xlu1 %173 }
  0x85   :  { %v103_v31 = vpop.permute.xlu0 %102 }
  0x87   :  { %v179_v42 = vpop.permute.xlu1 %178 }
  0x89   :  { %v238_v49 = vpop.permute.xlu0 %237 }
  0x8b   :  { %v243_v50 = vpop.permute.xlu1 %242 }
  0x8d   :  { %v258_v59 = vpop.permute.xlu0 %257 }
  0x8e   :  { %v263_v61 = vrot.slane %v258_v59, %v262_v57 }
  0xda   :  { %v157_v28 = vpop.f32.mrf.mxu0 }
  0xdb   :  { %v158_v30 = vadd.f32 %v157_v28, %v98_v27 }
  0xdc   :  { %v288_v29 = vpop.f32.mrf.mxu0 }
  0xdd   :  { %v164_v35 = vmax.f32 %v158_v30, 0.0 }
  0xde   :  { %v160_v32 = vpop.f32.mrf.mxu0 }
  0xdf   :  { %v161_v33 = vadd.f32 %v160_v32, %v103_v31 }
  0xe0   :  { %v289_v34 = vpop.f32.mrf.mxu0 }
  0xe1   :  { %v165_v36 = vmax.f32 %v161_v33, 0.0 }
  0xe3   :  { %v168_v37 = vpack.c.bf16 %v165_v36, %v164_v35 }
  0xe5   :  { %291 = vmatpush3.bf16.msra.mxu1 %v168_v37 }
  0xe8   :  { %293 = vmatmul.mubr.msk.bf16.vlgmr.msra.gmra.mxu1 %vm186_vm5, %v303_v38 }
 0x1a8   :  { %v224_v40 = vpop.f32.mrf.mxu1 }
 0x1a9   :  { %v225_v41 = vadd.f32 %v224_v40, %v174_v39 }
 0x1aa   :  { %v294_v43 = vpop.f32.mrf.mxu1 }
 0x1ab   :  { %v231_v45 = vmax.f32 %v225_v41, 0.0 }
 0x1ac   :  { %v227_v44 = vpop.f32.mrf.mxu1 }
 0x1ad   :  { %v228_v46 = vadd.f32 %v227_v44, %v179_v42  ;;  %v245_v51 = vmul.f32 %v238_v49, %v231_v45 }
 0x1ae   :  { %v295_v47 = vpop.f32.mrf.mxu1 }
 0x1af   :  { %v232_v48 = vmax.f32 %v228_v46, 0.0 }
 0x1b1   :  { %v246_v52 = vmul.f32 %v243_v50, %v232_v48 }
 0x1b3   :  { %v247_v53 = vadd.f32 %v246_v52, %v245_v51 }
 0x1b5   :  { %v248_v54 = vrot.slane %v247_v53, 4 }
 0x1b7   :  { %v249_v55 = vadd.f32 %v248_v54, %v247_v53 }
 0x1b9   :  { %v250_v56 = vrot.slane %v249_v55, 2 }
 0x1bb   :  { %v251_v58 = vadd.f32 %v250_v56, %v249_v55 }
 0x1bd   :  { %v252_v60 = vrot.slane %v251_v58, 1 }
 0x1bf   :  { %v253_v62 = vadd.f32 %v252_v60, %v251_v58 }
 0x1c1   :  { %v264_v63 = vadd.f32 %v263_v61, %v253_v62 }
 0x1c3   :  { %v265_v0 = vmul.f32 0.5, %v264_v63 }
 0x1c5   :  { %304 = vtanh.f32 %v265_v0 }
 0x1d2   :  { %v305_v1 = vpop.eup %304 }
 0x1d3   :  { %v267_v2 = vadd.f32 1.0, %v305_v1 }
 0x1d5   :  { %v268_v3 = vmul.f32 0.5, %v267_v2 }
 0x1d7   :  { %269 = vst [vmem:[%s402_s8] sm:$0x1] %v268_v3 }

</bundles_post_ra>
